<compile_context>
chip_gen: v6e
topology: v6e:2x2x1
jax: 0.10.0
libtpu: 0.0.40
codegen_flags: <defaults>
</compile_context>

<pallas_src>
import functools

import jax
import jax.numpy as jnp
import numpy as np
from jax import lax
from jax.experimental import pallas as pl
from jax.experimental.pallas import tpu as pltpu

# torchvision VGG19 "features" configuration (cfg 'E')
VGG19_CFG = [64, 64, 'M', 128, 128, 'M', 256, 256, 256, 256, 'M',
             512, 512, 512, 512, 'M', 512, 512, 512, 512, 'M']


# ---------------------------------------------------------------------------
# Small static helpers
# ---------------------------------------------------------------------------
def _round_up(x, m):
    return -(-x // m) * m


def _choose_row_block(m, cap=512):
    """Row tile: multiple of 8, <= cap, minimal padding waste."""
    n_blk = -(-m // cap)
    t = _round_up(-(-m // n_blk), 8)
    return min(t, _round_up(m, 8))


def _largest_divisor_leq(n, cap):
    cap = max(1, min(cap, n))
    for d in range(cap, 0, -1):
        if n % d == 0:
            return d
    return 1


# ---------------------------------------------------------------------------
# Conv3x3 + bias + ReLU kernel (tap-accumulation, manual halo DMA, bf16 MXU)
# ---------------------------------------------------------------------------
def _conv3x3_kernel(x_hbm, w_ref, b_ref, *rest, tm, halo, pb, wp, dual):
    if dual:
        o_post, o_pre, xbuf, sem = rest
    else:
        o_post, xbuf, sem = rest
        o_pre = None

    b = pl.program_id(0)
    i = pl.program_id(1)
    start = b * pb + i * tm
    cp = pltpu.make_async_copy(x_hbm.at[pl.ds(start, tm + halo)], xbuf, sem)
    cp.start()
    cp.wait()

    n_out = w_ref.shape[2]
    acc = jnp.zeros((tm, n_out), jnp.float32)
    for ky in range(3):
        for kx in range(3):
            s = ky * wp + kx
            acc = acc + jnp.dot(xbuf[s:s + tm, :], w_ref[ky * 3 + kx],
                                preferred_element_type=jnp.float32)
    acc = acc + b_ref[...]
    if dual:
        o_pre[0] = acc
    o_post[0] = jnp.maximum(acc, 0.0)


@functools.lru_cache(maxsize=None)
def _make_conv_call(B, n_blk, tm, halo, pb, wp, c_in, n_out, dual):
    mp = n_blk * tm
    kernel = functools.partial(_conv3x3_kernel, tm=tm, halo=halo, pb=pb,
                               wp=wp, dual=dual)
    act_shape = jax.ShapeDtypeStruct((B, mp, n_out), jnp.float32)
    if dual:
        out_shape = (act_shape, act_shape)
        out_specs = (pl.BlockSpec((1, tm, n_out), lambda b, i: (b, i, 0)),
                     pl.BlockSpec((1, tm, n_out), lambda b, i: (b, i, 0)))
    else:
        out_shape = act_shape
        out_specs = pl.BlockSpec((1, tm, n_out), lambda b, i: (b, i, 0))
    return pl.pallas_call(
        kernel,
        out_shape=out_shape,
        grid=(B, n_blk),
        in_specs=[pl.BlockSpec(memory_space=pl.ANY),
                  pl.BlockSpec((9, c_in, n_out), lambda b, i: (0, 0, 0)),
                  pl.BlockSpec((1, n_out), lambda b, i: (0, 0))],
        out_specs=out_specs,
        scratch_shapes=[pltpu.VMEM((tm + halo, c_in), jnp.bfloat16),
                        pltpu.SemaphoreType.DMA],
        compiler_params=pltpu.CompilerParams(
            dimension_semantics=("parallel", "parallel")),
    )


@functools.partial(jax.jit, static_argnames=("want_pre",))
def conv3x3_bias_relu(x_nhwc, w9, bias, *, want_pre=False):
    """3x3 conv (stride 1, pad 1) + bias + ReLU.  Returns (pre_relu_or_None, post_relu)."""
    B, H, W, C = x_nhwc.shape
    N = w9.shape[-1]
    Cp = _round_up(C, 8)           # pad tiny channel counts (first layer: 3 -> 8)
    Wp = W + 2
    Pb = (H + 2) * Wp              # padded rows per image
    Mout = H * Wp                  # output rows per image (padded-width coords)
    halo = 2 * Wp + 2
    tm = _choose_row_block(Mout, cap=512)
    n_blk = -(-Mout // tm)
    Mpad = n_blk * tm

    xp = jnp.pad(x_nhwc, ((0, 0), (1, 1), (1, 1), (0, Cp - C))).astype(jnp.bfloat16)
    xf = xp.reshape(B * Pb, Cp)
    tail = (Mpad - Mout) + halo    # keeps every halo read in bounds
    xf = jnp.pad(xf, ((0, tail), (0, 0)))
    if Cp != C:
        w9 = jnp.pad(w9, ((0, 0), (0, Cp - C), (0, 0)))

    call = _make_conv_call(B, n_blk, tm, halo, Pb, Wp, Cp, N, want_pre)
    if want_pre:
        post, pre = call(xf, w9, bias)
    else:
        post = call(xf, w9, bias)
        pre = None

    def unflatten(y):
        return y[:, :Mout, :].reshape(B, H, Wp, N)[:, :, :W, :]

    post = unflatten(post)
    pre = unflatten(pre) if want_pre else None
    return pre, post


# ---------------------------------------------------------------------------
# MaxPool 2x2 (stride 2) kernel — single input, no strided loads needed
# ---------------------------------------------------------------------------
def _maxpool_kernel(x_ref, o_ref, *, C):
    # x_ref: (tr, 2, Wo, 2*C)  ->  o_ref: (tr, Wo, C)
    top = x_ref[:, 0, :, :]
    bot = x_ref[:, 1, :, :]
    m = jnp.maximum(top, bot)
    o_ref[...] = jnp.maximum(m[:, :, :C], m[:, :, C:])


@functools.lru_cache(maxsize=None)
def _make_pool_call(R, Wo, C, tr):
    kernel = functools.partial(_maxpool_kernel, C=C)
    return pl.pallas_call(
        kernel,
        out_shape=jax.ShapeDtypeStruct((R, Wo, C), jnp.float32),
        grid=(R // tr,),
        in_specs=[pl.BlockSpec((tr, 2, Wo, 2 * C), lambda i: (i, 0, 0, 0))],
        out_specs=pl.BlockSpec((tr, Wo, C), lambda i: (i, 0, 0)),
        compiler_params=pltpu.CompilerParams(dimension_semantics=("parallel",)),
    )


@jax.jit
def maxpool2x2(x_nhwc):
    B, H, W, C = x_nhwc.shape
    Ho, Wo = H // 2, W // 2
    if (H % 2) or (W % 2):         # PyTorch MaxPool2d(2,2) floor behaviour
        x_nhwc = x_nhwc[:, :2 * Ho, :2 * Wo, :]
    R = B * Ho
    # Free bitcast reshape: the horizontal pool partner sits C lanes away.
    xr = x_nhwc.reshape(R, 2, Wo, 2 * C)
    row_bytes = 2 * Wo * 2 * C * 4
    cap = max(1, min(128, (4 << 20) // max(row_bytes, 1),
                     R // 2 if R >= 2 else 1))
    tr = _largest_divisor_leq(R, cap)
    out = _make_pool_call(R, Wo, C, tr)(xr)
    return out.reshape(B, Ho, Wo, C)


# ---------------------------------------------------------------------------
# Normalisation kernel (per-channel (img - mean) / std), lane-dense layout
# ---------------------------------------------------------------------------
def _norm_kernel(x_ref, m_ref, s_ref, o_ref):
    o_ref[...] = (x_ref[...] - m_ref[...]) * s_ref[...]


@functools.lru_cache(maxsize=None)
def _make_norm_call(R, n_cols, tc):
    return pl.pallas_call(
        _norm_kernel,
        out_shape=jax.ShapeDtypeStruct((R, n_cols), jnp.float32),
        grid=(n_cols // tc,),
        in_specs=[pl.BlockSpec((R, tc), lambda i: (0, i)),
                  pl.BlockSpec((R, 1), lambda i: (0, 0)),
                  pl.BlockSpec((R, 1), lambda i: (0, 0))],
        out_specs=pl.BlockSpec((R, tc), lambda i: (0, i)),
        compiler_params=pltpu.CompilerParams(dimension_semantics=("parallel",)),
    )


@jax.jit
def normalise_nchw(img_nchw, mean, inv_std):
    B, C, H, W = img_nchw.shape
    HW = H * W
    x2 = img_nchw.reshape(B * C, HW)
    tc = min(_round_up(HW, 128), 4096)
    HWp = _round_up(HW, tc)
    if HWp != HW:
        x2 = jnp.pad(x2, ((0, 0), (0, HWp - HW)))
    m = jnp.tile(mean.reshape(C, 1), (B, 1))
    s = jnp.tile(inv_std.reshape(C, 1), (B, 1))
    out = _make_norm_call(B * C, HWp, tc)(x2, m, s)
    return out[:, :HW].reshape(B, C, H, W)


# ---------------------------------------------------------------------------
# Parameter construction (deterministic, VGG19.features shapes)
# ---------------------------------------------------------------------------
def build_vgg19_features_params(key):
    """List of ('conv', (w9, b)) / ('relu', None) / ('pool', None) matching
    torchvision vgg19().features layer indices 0..36."""
    layers = []
    in_c = 3
    for v in VGG19_CFG:
        if v == 'M':
            layers.append(('pool', None))
        else:
            key, k1, k2 = jax.random.split(key, 3)
            # PyTorch Conv2d weight layout: (Cout, Cin, kh, kw)
            w = jax.random.normal(k1, (v, in_c, 3, 3), jnp.float32) * jnp.sqrt(2.0 / (9 * in_c))
            b = 0.01 * jax.random.normal(k2, (1, v), jnp.float32)
            # (Cout,Cin,kh,kw) -> (kh,kw,Cin,Cout) -> (9, Cin, Cout); tap t = ky*3+kx
            w9 = jnp.transpose(w, (2, 3, 1, 0)).reshape(9, in_c, v).astype(jnp.bfloat16)
            layers.append(('conv', (w9, b)))
            layers.append(('relu', None))
            in_c = v
    return layers


# ---------------------------------------------------------------------------
# NST module (Pallas implementation)
# ---------------------------------------------------------------------------
class NSTPallas:
    def __init__(self, style_layers_indices, normalise_image=False, key=None):
        self.style_layers_indices = style_layers_indices
        self.normalise_image = normalise_image
        self.layers = build_vgg19_features_params(key)
        self.mean = jnp.asarray([0.485, 0.456, 0.406], jnp.float32)
        self.std = jnp.asarray([0.229, 0.224, 0.225], jnp.float32)
        self.inv_std = 1.0 / self.std

    def __call__(self, img_nchw):
        if self.normalise_image:
            img_nchw = normalise_nchw(img_nchw, self.mean, self.inv_std)
        x = jnp.transpose(img_nchw, (0, 2, 3, 1))  # NCHW -> NHWC
        activations = []
        i = 0
        n = len(self.layers)
        while i < n:
            kind, params = self.layers[i]
            if kind == 'conv':
                # The next layer is always ReLU in VGG19.features -> fuse it.
                want_pre = str(i) in self.style_layers_indices
                pre, post = conv3x3_bias_relu(x, *params, want_pre=want_pre)
                if want_pre:
                    activations.append(jnp.transpose(pre, (0, 3, 1, 2)))
                if str(i + 1) in self.style_layers_indices:
                    activations.append(jnp.transpose(post, (0, 3, 1, 2)))
                x = post
                i += 2
            else:  # 'pool'
                x = maxpool2x2(x)
                if str(i) in self.style_layers_indices:
                    activations.append(jnp.transpose(x, (0, 3, 1, 2)))
                i += 1
        return activations


# ---------------------------------------------------------------------------
# Pure-JAX reference (same bf16-input / f32-accumulate convolution semantics)
# ---------------------------------------------------------------------------
def reference_forward(img_nchw, layers, mean, std, normalise_image, style_idx):
    x = img_nchw
    if normalise_image:
        x = (x - mean.reshape(1, 3, 1, 1)) / std.reshape(1, 3, 1, 1)
    acts = []
    for idx, (kind, params) in enumerate(layers):
        if kind == 'conv':
            w9, b = params
            cin, cout = w9.shape[1], w9.shape[2]
            w4 = w9.reshape(3, 3, cin, cout)  # HWIO
            x = lax.conv_general_dilated(
                x.astype(jnp.bfloat16), w4, window_strides=(1, 1),
                padding=((1, 1), (1, 1)),
                dimension_numbers=('NCHW', 'HWIO', 'NCHW'),
                preferred_element_type=jnp.float32) + b.reshape(1, cout, 1, 1)
        elif kind == 'relu':
            x = jnp.maximum(x, 0.0)
        else:
            x = lax.reduce_window(x, -jnp.inf, lax.max,
                                  (1, 1, 2, 2), (1, 1, 2, 2), 'VALID')
        if str(idx) in style_idx:
            acts.append(x)
    return acts


# ---------------------------------------------------------------------------
if __name__ == "__main__":
    key = jax.random.PRNGKey(0)
    key, img_key, param_key = jax.random.split(key, 3)

    # NCHW image batch, 3 channels; spatial 32 so all 5 VGG19 max-pools are valid
    # (32 -> 16 -> 8 -> 4 -> 2 -> 1).
    img = jax.random.uniform(img_key, (2, 3, 32, 32), jnp.float32)

    style_layers_indices = ['0', '5', '10', '19', '28']  # conv1_1..conv5_1 (pre-ReLU)
    model = NSTPallas(style_layers_indices, normalise_image=True, key=param_key)

    acts = model(img)
    acts = jax.block_until_ready(acts)

    # Shape check against PyTorch NCHW conventions.
    expected_shapes = [(2, 64, 32, 32), (2, 128, 16, 16), (2, 256, 8, 8),
                       (2, 512, 4, 4), (2, 512, 2, 2)]
    assert [tuple(a.shape) for a in acts] == expected_shapes, \
        f"unexpected activation shapes: {[a.shape for a in acts]}"

    # Numerical check against a pure-JAX reference.
    ref_acts = reference_forward(img, model.layers, model.mean, model.std,
                                 model.normalise_image, style_layers_indices)
    for a, r in zip(acts, ref_acts):
        a_np, r_np = np.asarray(a), np.asarray(r)
        denom = max(np.max(np.abs(r_np)), 1e-6)
        rel_err = np.max(np.abs(a_np - r_np)) / denom
        assert rel_err < 2e-2, f"mismatch vs reference, rel_err={rel_err}"

    print("KERNEL_OK")
</pallas_src>

<mosaic_0001>
module attributes {stable_mosaic.version = 11 : i64} {
  func.func @_norm_kernel(%arg0: i32, %arg1: memref<6x1024xf32, #tpu.memory_space<vmem>>, %arg2: memref<6x1xf32, #tpu.memory_space<vmem>>, %arg3: memref<6x1xf32, #tpu.memory_space<vmem>>, %arg4: memref<6x1024xf32, #tpu.memory_space<vmem>>) attributes {dimension_semantics = [#tpu.dimension_semantics<parallel>], iteration_bounds = array<i64: 1>, scalar_prefetch = 0 : i64, scratch_operands = 0 : i64, tpu.core_type = #tpu.core_type<tc>, window_params = [{transform_indices = @transform_0, window_bounds = array<i64: 6, 1024>}, {pipeline_mode = #tpu.pipeline_mode<synchronous>, transform_indices = @transform_1, window_bounds = array<i64: 6, 1>}, {pipeline_mode = #tpu.pipeline_mode<synchronous>, transform_indices = @transform_2, window_bounds = array<i64: 6, 1>}, {transform_indices = @transform_3, window_bounds = array<i64: 6, 1024>}]} {
    %c0 = arith.constant 0 : index
    %c0_0 = arith.constant 0 : index
    %0 = vector.load %arg1[%c0, %c0_0] : memref<6x1024xf32, #tpu.memory_space<vmem>>, vector<6x1024xf32>
    %c0_1 = arith.constant 0 : index
    %c0_2 = arith.constant 0 : index
    %1 = vector.load %arg2[%c0_1, %c0_2] : memref<6x1xf32, #tpu.memory_space<vmem>>, vector<6x1xf32>
    %2 = vector.broadcast %1 : vector<6x1xf32> to vector<6x1024xf32>
    %3 = arith.subf %0, %2 : vector<6x1024xf32>
    %c0_3 = arith.constant 0 : index
    %c0_4 = arith.constant 0 : index
    %4 = vector.load %arg3[%c0_3, %c0_4] : memref<6x1xf32, #tpu.memory_space<vmem>>, vector<6x1xf32>
    %5 = vector.broadcast %4 : vector<6x1xf32> to vector<6x1024xf32>
    %6 = arith.mulf %3, %5 : vector<6x1024xf32>
    %c0_5 = arith.constant 0 : index
    %c0_6 = arith.constant 0 : index
    %7 = vector.load %arg4[%c0_5, %c0_6] : memref<6x1024xf32, #tpu.memory_space<vmem>>, vector<6x1024xf32>
    tpu.vector_store %arg4[%c0_5, %c0_6], %6 {strides = array<i32>} : memref<6x1024xf32, #tpu.memory_space<vmem>>, vector<6x1024xf32>,
    return
  }
  func.func @transform_0(%arg0: i32) -> (i32, i32) {
    %c0_i32 = arith.constant 0 : i32
    %c0_i32_0 = arith.constant 0 : i32
    return %c0_i32, %arg0 : i32, i32
  }
  func.func @transform_1(%arg0: i32) -> (i32, i32) {
    %c0_i32 = arith.constant 0 : i32
    %c0_i32_0 = arith.constant 0 : i32
    %c0_i32_1 = arith.constant 0 : i32
    return %c0_i32, %c0_i32_0 : i32, i32
  }
  func.func @transform_2(%arg0: i32) -> (i32, i32) {
    %c0_i32 = arith.constant 0 : i32
    %c0_i32_0 = arith.constant 0 : i32
    %c0_i32_1 = arith.constant 0 : i32
    return %c0_i32, %c0_i32_0 : i32, i32
  }
  func.func @transform_3(%arg0: i32) -> (i32, i32) {
    %c0_i32 = arith.constant 0 : i32
    %c0_i32_0 = arith.constant 0 : i32
    return %c0_i32, %arg0 : i32, i32
  }
}

</mosaic_0001>

<bundles_post_ra>
// kernel: normalise_nchw.1
= control target key start
LH: loop header
LB: loop body
LE: loop exit
PB: predicated region body
PF: predicated region fallthrough
CT: control target
= control target key end

     0   :  { %v64_v0 = vmov 0   ;;  %s139_s1 = inlined_call_operand.vmem [shape: f32[6,1], index: 1, kind: input, shape index: {}]   ;;  %s140_s2 = inlined_call_operand.vmem [shape: f32[6,1], index: 2, kind: input, shape index: {}]   ;;  %s141_s0 = inlined_call_operand.vmem [shape: f32[6,1024], index: 0, kind: input, shape index: {}]   ;;  %s142_s3 = inlined_call_operand.vmem [shape: f32[6,1024], index: 3, kind: output, shape index: {}]  }
   0x1   :  { %63 = vset.pattern.permute.xlu0 %v64_v0  ;;  %v22_v1 = vld [vmem:[%s139_s1] sm:$0x3f]  ;;  %v15_v4 = vld [vmem:[%s141_s0 + $0x8] sm:$0x3f]  ;;  %v16_v6 = vld [vmem:[%s141_s0 + $0x10] sm:$0x3f] }
   0x2   :  { %25 = vperm.xlu0 %63, %v22_v1   ;;  %v36_v2 = vld [vmem:[%s140_s2] sm:$0x3f]  ;;  %v17_v7 = vld [vmem:[%s141_s0 + $0x18] sm:$0x3f]  ;;  %v19_v9 = vld [vmem:[%s141_s0 + $0x28] sm:$0x3f] }
   0x3   :  { %v14_v3 = vld [vmem:[%s141_s0] sm:$0x3f]  ;;  %v20_v10 = vld [vmem:[%s141_s0 + $0x30] sm:$0x3f]  ;;  %v21_v11 = vld [vmem:[%s141_s0 + $0x38] sm:$0x3f] }
   0x4   :  { %v18_v8 = vld [vmem:[%s141_s0 + $0x20] sm:$0x3f] }
   0x6   :  { %39 = vperm.xlu0 %63, %v36_v2  }
  0x7d   :  { %v26_v5 = vpop.permute.xlu0 %25 }
  0x7e   :  { %v28_v12 = vsub.f32 %v14_v3, %v26_v5  ;;  %v29_v13 = vsub.f32 %v15_v4, %v26_v5  ;;  %v30_v14 = vsub.f32 %v16_v6, %v26_v5  ;;  %v31_v15 = vsub.f32 %v17_v7, %v26_v5 }
  0x7f   :  { %v32_v17 = vsub.f32 %v18_v8, %v26_v5  ;;  %v33_v18 = vsub.f32 %v19_v9, %v26_v5  ;;  %v34_v19 = vsub.f32 %v20_v10, %v26_v5  ;;  %v35_v20 = vsub.f32 %v21_v11, %v26_v5 }
  0x81   :  { %v40_v16 = vpop.permute.xlu0 %39 }
  0x82   :  { %v42_v21 = vmul.f32 %v40_v16, %v28_v12  ;;  %v43_v22 = vmul.f32 %v40_v16, %v29_v13  ;;  %v44_v23 = vmul.f32 %v40_v16, %v30_v14  ;;  %v45_v24 = vmul.f32 %v40_v16, %v31_v15 }
  0x83   :  { %v46_v25 = vmul.f32 %v40_v16, %v32_v17  ;;  %v47_v26 = vmul.f32 %v40_v16, %v33_v18  ;;  %v48_v27 = vmul.f32 %v40_v16, %v34_v19  ;;  %v49_v28 = vmul.f32 %v40_v16, %v35_v20 }
  0x84   :  { %50 = vst [vmem:[%s142_s3] sm:$0x3f] %v42_v21  ;;  %51 = vst [vmem:[%s142_s3 + $0x8] sm:$0x3f] %v43_v22 }
  0x85   :  { %52 = vst [vmem:[%s142_s3 + $0x10] sm:$0x3f] %v44_v23  ;;  %53 = vst [vmem:[%s142_s3 + $0x18] sm:$0x3f] %v45_v24 }
  0x86   :  { %54 = vst [vmem:[%s142_s3 + $0x20] sm:$0x3f] %v46_v25  ;;  %55 = vst [vmem:[%s142_s3 + $0x28] sm:$0x3f] %v47_v26 }
  0x87   :  { %56 = vst [vmem:[%s142_s3 + $0x30] sm:$0x3f] %v48_v27  ;;  %57 = vst [vmem:[%s142_s3 + $0x38] sm:$0x3f] %v49_v28 }

</bundles_post_ra>
